<compile_context>
chip_gen: v7x
topology: tpu7x:2x2x1
jax: 0.10.0
libtpu: 0.0.40
codegen_flags: <defaults>
</compile_context>

<pallas_src>
import jax
import jax.numpy as jnp
from jax.experimental import pallas as pl
from jax.experimental.pallas import tpu as pltpu


def _cdiv(a, b):
    return -(-a // b)


def _round_up(a, b):
    return _cdiv(a, b) * b


# ---------------------------------------------------------------------------
# Elementwise color math (shared by kernel and pure-JAX reference).
# ---------------------------------------------------------------------------

def _srgb_to_linear(v):
    """sRGB companding inverse, v in [0, 1] (skimage rgb2xyz convention)."""
    lo = v * (1.0 / 12.92)
    base = jnp.maximum((v + 0.055) * (1.0 / 1.055), 1e-8)
    hi = jnp.exp(2.4 * jnp.log(base))            # base**2.4 via exp/log (EUP)
    return jnp.where(v > 0.04045, hi, lo)


def _lab_f(t):
    """f(t) of the XYZ->Lab transform (skimage xyz2lab convention)."""
    cbrt = jnp.exp(jnp.log(jnp.maximum(t, 1e-8)) * (1.0 / 3.0))
    lin = 7.787 * t + 16.0 / 116.0
    return jnp.where(t > 0.008856, cbrt, lin)


def _lab_ab(r, g, b):
    """a*, b* channels of CIELAB for RGB planes in [0, 1] (D65, 2deg)."""
    rl = _srgb_to_linear(r)
    gl = _srgb_to_linear(g)
    bl = _srgb_to_linear(b)
    x = 0.412453 * rl + 0.357580 * gl + 0.180423 * bl
    y = 0.212671 * rl + 0.715160 * gl + 0.072169 * bl
    z = 0.019334 * rl + 0.119193 * gl + 0.950227 * bl
    fx = _lab_f(x * (1.0 / 0.95047))
    fy = _lab_f(y)
    fz = _lab_f(z * (1.0 / 1.08883))
    return 500.0 * (fx - fy), 200.0 * (fy - fz)


def _atan_poly(z):
    """Cephes atanf minimax polynomial, valid for |z| <= tan(pi/8)."""
    z2 = z * z
    p = 8.05374449538e-2
    p = p * z2 - 1.38776856032e-1
    p = p * z2 + 1.99777106478e-1
    p = p * z2 - 3.33329491539e-1
    return p * z2 * z + z


def _atan_01(a):
    """atan(a) for a in [0, 1]."""
    big = a > 0.41421356237309503          # tan(pi/8)
    z = jnp.where(big, (a - 1.0) / (a + 1.0), a)
    r = _atan_poly(z)
    return jnp.where(big, r + jnp.pi / 4.0, r)


def _atan2_2pi(y, x):
    """Angle of (x, y) in [0, 2*pi), matching skimage's _cart2polar_2pi."""
    ax = jnp.abs(x)
    ay = jnp.abs(y)
    mx = jnp.maximum(ax, ay)
    mn = jnp.minimum(ax, ay)
    ratio = mn / jnp.where(mx == 0.0, 1.0, mx)   # safe: 0 when x == y == 0
    r = _atan_01(ratio)
    r = jnp.where(ay > ax, jnp.pi * 0.5 - r, r)
    r = jnp.where(x < 0.0, jnp.pi - r, r)
    r = jnp.where(y < 0.0, -r, r)
    return jnp.where(r < 0.0, r + 2.0 * jnp.pi, r)


def _image_hue(img):
    """LCh hue in radians [0, 2*pi) of a channels-first RGB slab in [-1, 1]."""
    r = (img[0].astype(jnp.float32) + 1.0) * 0.5
    g = (img[1].astype(jnp.float32) + 1.0) * 0.5
    b = (img[2].astype(jnp.float32) + 1.0) * 0.5
    a_star, b_star = _lab_ab(r, g, b)
    return _atan2_2pi(b_star, a_star)


# ---------------------------------------------------------------------------
# Kernel.
# ---------------------------------------------------------------------------

def _hue_l1_kernel(x_ref, y_ref, o_ref):
    # x_ref / y_ref: (3, ts, 128) slab of batch element 0.
    # o_ref: (1, 8, 128) per-core partial-sum accumulator (resident across the
    # reduction axis because its index_map ignores the tile index).
    ti = pl.program_id(1)

    @pl.when(ti == 0)
    def _():
        o_ref[...] = jnp.zeros_like(o_ref)

    hx = _image_hue(x_ref)                     # (ts, 128)
    hy = _image_hue(y_ref)
    diff = jnp.abs(hx - hy)

    ts = diff.shape[0]
    partial = diff.reshape(ts // 8, 8, 128).sum(axis=0)   # cheap VPU adds
    o_ref[...] += partial.reshape(1, 8, 128)


def hue_l1_loss(inp, tgt, *, max_tile_rows=512):
    """inp, tgt: (B, 3, H, W) in [-1, 1] (NCHW). Returns scalar f32 loss."""
    assert inp.shape == tgt.shape and inp.ndim == 4
    b, c, h, w = inp.shape
    assert c == 3, "HueL1Loss2 expects RGB (3-channel) images"
    n = h * w
    lane = 128

    # Lane-dense flattened layout: n pixels -> (rows, 128).  Pad (with zeros,
    # identical in both images so they contribute 0 to the loss) so the
    # 2-core x tiles grid covers the image exactly -> no masking / OOB blocks.
    r0 = _cdiv(n, lane)
    ts = min(max_tile_rows, _round_up(_cdiv(r0, 2), 8))   # rows per tile, %8==0
    t_core = _cdiv(_cdiv(r0, ts), 2)                      # tiles per core
    rows = 2 * t_core * ts
    n_cov = rows * lane

    x = inp.reshape(b, c, n)
    y = tgt.reshape(b, c, n)
    if n_cov != n:
        pad = ((0, 0), (0, 0), (0, n_cov - n))
        x = jnp.pad(x, pad)
        y = jnp.pad(y, pad)
    x = x.reshape(b, c, rows, lane)
    y = y.reshape(b, c, rows, lane)

    def img_map(ci, ti):
        # Batch element 0 folded into the BlockSpec (no wrapper slice copy).
        return (0, 0, ci * t_core + ti, 0)

    partials = pl.pallas_call(
        _hue_l1_kernel,
        out_shape=jax.ShapeDtypeStruct((2, 8, lane), jnp.float32),
        grid_spec=pltpu.PrefetchScalarGridSpec(
            num_scalar_prefetch=0,
            grid=(2, t_core),
            in_specs=[
                pl.BlockSpec((None, c, ts, lane), img_map),
                pl.BlockSpec((None, c, ts, lane), img_map),
            ],
            out_specs=pl.BlockSpec((1, 8, lane), lambda ci, ti: (ci, 0, 0)),
        ),
        compiler_params=pltpu.CompilerParams(
            dimension_semantics=("parallel", "arbitrary"),
            vmem_limit_bytes=32 * 1024 * 1024,
        ),
    )(x, y)

    return jnp.sum(partials) * (1.0 / n)


# ---------------------------------------------------------------------------
# Pure-JAX reference (mirrors the numpy/skimage path; uses jnp.arctan2).
# ---------------------------------------------------------------------------

def _hue_l1_reference(inp, tgt):
    def hue(img):  # (3, H, W) in [-1, 1]
        r = (img[0].astype(jnp.float32) + 1.0) * 0.5
        g = (img[1].astype(jnp.float32) + 1.0) * 0.5
        b = (img[2].astype(jnp.float32) + 1.0) * 0.5
        a_star, b_star = _lab_ab(r, g, b)
        hh = jnp.arctan2(b_star, a_star)
        return jnp.where(hh < 0.0, hh + 2.0 * jnp.pi, hh)
    return jnp.mean(jnp.abs(hue(inp[0]) - hue(tgt[0])))


if __name__ == "__main__":
    key = jax.random.PRNGKey(0)
    k1, k2 = jax.random.split(key)
    B, C, H, W = 2, 3, 16, 16
    inp = jax.random.uniform(k1, (B, C, H, W), jnp.float32, minval=-1.0, maxval=1.0)
    tgt = jax.random.uniform(k2, (B, C, H, W), jnp.float32, minval=-1.0, maxval=1.0)

    loss = jax.block_until_ready(hue_l1_loss(inp, tgt))
    ref = jax.block_until_ready(_hue_l1_reference(inp, tgt))

    assert jnp.allclose(loss, ref, rtol=1e-4, atol=1e-4), (loss, ref)
    print("KERNEL_OK")
</pallas_src>

<mosaic_0001>
module attributes {stable_mosaic.version = 11 : i64} {
  func.func @_hue_l1_kernel(%arg0: i32, %arg1: i32, %arg2: memref<1x3x8x128xf32, #tpu.memory_space<vmem>>, %arg3: memref<1x3x8x128xf32, #tpu.memory_space<vmem>>, %arg4: memref<1x8x128xf32, #tpu.memory_space<vmem>>) attributes {dimension_semantics = [#tpu.dimension_semantics<parallel>, #tpu.dimension_semantics<arbitrary>], iteration_bounds = array<i64: 2, 1>, scalar_prefetch = 0 : i64, scratch_operands = 0 : i64, tpu.core_type = #tpu.core_type<tc>, window_params = [{transform_indices = @transform_0, window_bounds = array<i64: 1, 3, 8, 128>}, {transform_indices = @transform_1, window_bounds = array<i64: 1, 3, 8, 128>}, {transform_indices = @transform_2, window_bounds = array<i64: 1, 8, 128>}]} {
    %c0_i32 = arith.constant 0 : i32
    %0 = arith.cmpi eq, %arg1, %c0_i32 : i32
    %1 = arith.extui %0 : i1 to i32
    %c0_i32_0 = arith.constant 0 : i32
    %2 = arith.cmpi ne, %1, %c0_i32_0 : i32
    scf.if %2 {
      %cst_166 = arith.constant 0.000000e+00 : f32
      %389 = vector.broadcast %cst_166 : f32 to vector<1x8x128xf32>
      %c0_167 = arith.constant 0 : index
      %c0_168 = arith.constant 0 : index
      %c0_169 = arith.constant 0 : index
      %390 = vector.load %arg4[%c0_167, %c0_168, %c0_169] : memref<1x8x128xf32, #tpu.memory_space<vmem>>, vector<1x8x128xf32>
      tpu.vector_store %arg4[%c0_167, %c0_168, %c0_169], %389 {strides = array<i32>} : memref<1x8x128xf32, #tpu.memory_space<vmem>>, vector<1x8x128xf32>,
    } else {
    }
    %c0 = arith.constant 0 : index
    %c0_1 = arith.constant 0 : index
    %c0_2 = arith.constant 0 : index
    %c0_3 = arith.constant 0 : index
    %3 = vector.load %arg2[%c0, %c0_1, %c0_2, %c0_3] : memref<1x3x8x128xf32, #tpu.memory_space<vmem>>, vector<1x1x8x128xf32>
    %4 = vector.shape_cast %3 : vector<1x1x8x128xf32> to vector<8x128xf32>
    %cst = arith.constant 1.000000e+00 : f32
    %5 = vector.broadcast %cst : f32 to vector<8x128xf32>
    %6 = arith.addf %4, %5 : vector<8x128xf32>
    %cst_4 = arith.constant 5.000000e-01 : f32
    %7 = vector.broadcast %cst_4 : f32 to vector<8x128xf32>
    %8 = arith.mulf %6, %7 : vector<8x128xf32>
    %c0_5 = arith.constant 0 : index
    %c1 = arith.constant 1 : index
    %c0_6 = arith.constant 0 : index
    %c0_7 = arith.constant 0 : index
    %9 = vector.load %arg2[%c0_5, %c1, %c0_6, %c0_7] : memref<1x3x8x128xf32, #tpu.memory_space<vmem>>, vector<1x1x8x128xf32>
    %10 = vector.shape_cast %9 : vector<1x1x8x128xf32> to vector<8x128xf32>
    %cst_8 = arith.constant 1.000000e+00 : f32
    %11 = vector.broadcast %cst_8 : f32 to vector<8x128xf32>
    %12 = arith.addf %10, %11 : vector<8x128xf32>
    %cst_9 = arith.constant 5.000000e-01 : f32
    %13 = vector.broadcast %cst_9 : f32 to vector<8x128xf32>
    %14 = arith.mulf %12, %13 : vector<8x128xf32>
    %c0_10 = arith.constant 0 : index
    %c2 = arith.constant 2 : index
    %c0_11 = arith.constant 0 : index
    %c0_12 = arith.constant 0 : index
    %15 = vector.load %arg2[%c0_10, %c2, %c0_11, %c0_12] : memref<1x3x8x128xf32, #tpu.memory_space<vmem>>, vector<1x1x8x128xf32>
    %16 = vector.shape_cast %15 : vector<1x1x8x128xf32> to vector<8x128xf32>
    %cst_13 = arith.constant 1.000000e+00 : f32
    %17 = vector.broadcast %cst_13 : f32 to vector<8x128xf32>
    %18 = arith.addf %16, %17 : vector<8x128xf32>
    %cst_14 = arith.constant 5.000000e-01 : f32
    %19 = vector.broadcast %cst_14 : f32 to vector<8x128xf32>
    %20 = arith.mulf %18, %19 : vector<8x128xf32>
    %cst_15 = arith.constant 0.0773993805 : f32
    %21 = vector.broadcast %cst_15 : f32 to vector<8x128xf32>
    %22 = arith.mulf %8, %21 : vector<8x128xf32>
    %cst_16 = arith.constant 5.500000e-02 : f32
    %23 = vector.broadcast %cst_16 : f32 to vector<8x128xf32>
    %24 = arith.addf %8, %23 : vector<8x128xf32>
    %cst_17 = arith.constant 0.947867274 : f32
    %25 = vector.broadcast %cst_17 : f32 to vector<8x128xf32>
    %26 = arith.mulf %24, %25 : vector<8x128xf32>
    %cst_18 = arith.constant 9.99999993E-9 : f32
    %27 = vector.broadcast %cst_18 : f32 to vector<8x128xf32>
    %28 = arith.maximumf %26, %27 : vector<8x128xf32>
    %29 = math.log %28 : vector<8x128xf32>
    %cst_19 = arith.constant 2.400000e+00 : f32
    %30 = vector.broadcast %cst_19 : f32 to vector<8x128xf32>
    %31 = arith.mulf %30, %29 : vector<8x128xf32>
    %32 = math.exp %31 : vector<8x128xf32>
    %cst_20 = arith.constant 4.045000e-02 : f32
    %33 = vector.broadcast %cst_20 : f32 to vector<8x128xf32>
    %34 = arith.cmpf ogt, %8, %33 : vector<8x128xf32>
    %35 = arith.select %34, %32, %22 : vector<8x128xi1>, vector<8x128xf32>
    %cst_21 = arith.constant 0.0773993805 : f32
    %36 = vector.broadcast %cst_21 : f32 to vector<8x128xf32>
    %37 = arith.mulf %14, %36 : vector<8x128xf32>
    %cst_22 = arith.constant 5.500000e-02 : f32
    %38 = vector.broadcast %cst_22 : f32 to vector<8x128xf32>
    %39 = arith.addf %14, %38 : vector<8x128xf32>
    %cst_23 = arith.constant 0.947867274 : f32
    %40 = vector.broadcast %cst_23 : f32 to vector<8x128xf32>
    %41 = arith.mulf %39, %40 : vector<8x128xf32>
    %cst_24 = arith.constant 9.99999993E-9 : f32
    %42 = vector.broadcast %cst_24 : f32 to vector<8x128xf32>
    %43 = arith.maximumf %41, %42 : vector<8x128xf32>
    %44 = math.log %43 : vector<8x128xf32>
    %cst_25 = arith.constant 2.400000e+00 : f32
    %45 = vector.broadcast %cst_25 : f32 to vector<8x128xf32>
    %46 = arith.mulf %45, %44 : vector<8x128xf32>
    %47 = math.exp %46 : vector<8x128xf32>
    %cst_26 = arith.constant 4.045000e-02 : f32
    %48 = vector.broadcast %cst_26 : f32 to vector<8x128xf32>
    %49 = arith.cmpf ogt, %14, %48 : vector<8x128xf32>
    %50 = arith.select %49, %47, %37 : vector<8x128xi1>, vector<8x128xf32>
    %cst_27 = arith.constant 0.0773993805 : f32
    %51 = vector.broadcast %cst_27 : f32 to vector<8x128xf32>
    %52 = arith.mulf %20, %51 : vector<8x128xf32>
    %cst_28 = arith.constant 5.500000e-02 : f32
    %53 = vector.broadcast %cst_28 : f32 to vector<8x128xf32>
    %54 = arith.addf %20, %53 : vector<8x128xf32>
    %cst_29 = arith.constant 0.947867274 : f32
    %55 = vector.broadcast %cst_29 : f32 to vector<8x128xf32>
    %56 = arith.mulf %54, %55 : vector<8x128xf32>
    %cst_30 = arith.constant 9.99999993E-9 : f32
    %57 = vector.broadcast %cst_30 : f32 to vector<8x128xf32>
    %58 = arith.maximumf %56, %57 : vector<8x128xf32>
    %59 = math.log %58 : vector<8x128xf32>
    %cst_31 = arith.constant 2.400000e+00 : f32
    %60 = vector.broadcast %cst_31 : f32 to vector<8x128xf32>
    %61 = arith.mulf %60, %59 : vector<8x128xf32>
    %62 = math.exp %61 : vector<8x128xf32>
    %cst_32 = arith.constant 4.045000e-02 : f32
    %63 = vector.broadcast %cst_32 : f32 to vector<8x128xf32>
    %64 = arith.cmpf ogt, %20, %63 : vector<8x128xf32>
    %65 = arith.select %64, %62, %52 : vector<8x128xi1>, vector<8x128xf32>
    %cst_33 = arith.constant 4.124530e-01 : f32
    %66 = vector.broadcast %cst_33 : f32 to vector<8x128xf32>
    %67 = arith.mulf %66, %35 : vector<8x128xf32>
    %cst_34 = arith.constant 3.575800e-01 : f32
    %68 = vector.broadcast %cst_34 : f32 to vector<8x128xf32>
    %69 = arith.mulf %68, %50 : vector<8x128xf32>
    %70 = arith.addf %67, %69 : vector<8x128xf32>
    %cst_35 = arith.constant 1.804230e-01 : f32
    %71 = vector.broadcast %cst_35 : f32 to vector<8x128xf32>
    %72 = arith.mulf %71, %65 : vector<8x128xf32>
    %73 = arith.addf %70, %72 : vector<8x128xf32>
    %cst_36 = arith.constant 2.126710e-01 : f32
    %74 = vector.broadcast %cst_36 : f32 to vector<8x128xf32>
    %75 = arith.mulf %74, %35 : vector<8x128xf32>
    %cst_37 = arith.constant 7.151600e-01 : f32
    %76 = vector.broadcast %cst_37 : f32 to vector<8x128xf32>
    %77 = arith.mulf %76, %50 : vector<8x128xf32>
    %78 = arith.addf %75, %77 : vector<8x128xf32>
    %cst_38 = arith.constant 7.216900e-02 : f32
    %79 = vector.broadcast %cst_38 : f32 to vector<8x128xf32>
    %80 = arith.mulf %79, %65 : vector<8x128xf32>
    %81 = arith.addf %78, %80 : vector<8x128xf32>
    %cst_39 = arith.constant 1.933400e-02 : f32
    %82 = vector.broadcast %cst_39 : f32 to vector<8x128xf32>
    %83 = arith.mulf %82, %35 : vector<8x128xf32>
    %cst_40 = arith.constant 1.191930e-01 : f32
    %84 = vector.broadcast %cst_40 : f32 to vector<8x128xf32>
    %85 = arith.mulf %84, %50 : vector<8x128xf32>
    %86 = arith.addf %83, %85 : vector<8x128xf32>
    %cst_41 = arith.constant 9.502270e-01 : f32
    %87 = vector.broadcast %cst_41 : f32 to vector<8x128xf32>
    %88 = arith.mulf %87, %65 : vector<8x128xf32>
    %89 = arith.addf %86, %88 : vector<8x128xf32>
    %cst_42 = arith.constant 1.05211103 : f32
    %90 = vector.broadcast %cst_42 : f32 to vector<8x128xf32>
    %91 = arith.mulf %73, %90 : vector<8x128xf32>
    %cst_43 = arith.constant 9.99999993E-9 : f32
    %92 = vector.broadcast %cst_43 : f32 to vector<8x128xf32>
    %93 = arith.maximumf %91, %92 : vector<8x128xf32>
    %94 = math.log %93 : vector<8x128xf32>
    %cst_44 = arith.constant 0.333333343 : f32
    %95 = vector.broadcast %cst_44 : f32 to vector<8x128xf32>
    %96 = arith.mulf %94, %95 : vector<8x128xf32>
    %97 = math.exp %96 : vector<8x128xf32>
    %cst_45 = arith.constant 7.787000e+00 : f32
    %98 = vector.broadcast %cst_45 : f32 to vector<8x128xf32>
    %99 = arith.mulf %98, %91 : vector<8x128xf32>
    %cst_46 = arith.constant 0.137931034 : f32
    %100 = vector.broadcast %cst_46 : f32 to vector<8x128xf32>
    %101 = arith.addf %99, %100 : vector<8x128xf32>
    %cst_47 = arith.constant 8.856000e-03 : f32
    %102 = vector.broadcast %cst_47 : f32 to vector<8x128xf32>
    %103 = arith.cmpf ogt, %91, %102 : vector<8x128xf32>
    %104 = arith.select %103, %97, %101 : vector<8x128xi1>, vector<8x128xf32>
    %cst_48 = arith.constant 9.99999993E-9 : f32
    %105 = vector.broadcast %cst_48 : f32 to vector<8x128xf32>
    %106 = arith.maximumf %81, %105 : vector<8x128xf32>
    %107 = math.log %106 : vector<8x128xf32>
    %cst_49 = arith.constant 0.333333343 : f32
    %108 = vector.broadcast %cst_49 : f32 to vector<8x128xf32>
    %109 = arith.mulf %107, %108 : vector<8x128xf32>
    %110 = math.exp %109 : vector<8x128xf32>
    %cst_50 = arith.constant 7.787000e+00 : f32
    %111 = vector.broadcast %cst_50 : f32 to vector<8x128xf32>
    %112 = arith.mulf %111, %81 : vector<8x128xf32>
    %cst_51 = arith.constant 0.137931034 : f32
    %113 = vector.broadcast %cst_51 : f32 to vector<8x128xf32>
    %114 = arith.addf %112, %113 : vector<8x128xf32>
    %cst_52 = arith.constant 8.856000e-03 : f32
    %115 = vector.broadcast %cst_52 : f32 to vector<8x128xf32>
    %116 = arith.cmpf ogt, %81, %115 : vector<8x128xf32>
    %117 = arith.select %116, %110, %114 : vector<8x128xi1>, vector<8x128xf32>
    %cst_53 = arith.constant 0.918417036 : f32
    %118 = vector.broadcast %cst_53 : f32 to vector<8x128xf32>
    %119 = arith.mulf %89, %118 : vector<8x128xf32>
    %cst_54 = arith.constant 9.99999993E-9 : f32
    %120 = vector.broadcast %cst_54 : f32 to vector<8x128xf32>
    %121 = arith.maximumf %119, %120 : vector<8x128xf32>
    %122 = math.log %121 : vector<8x128xf32>
    %cst_55 = arith.constant 0.333333343 : f32
    %123 = vector.broadcast %cst_55 : f32 to vector<8x128xf32>
    %124 = arith.mulf %122, %123 : vector<8x128xf32>
    %125 = math.exp %124 : vector<8x128xf32>
    %cst_56 = arith.constant 7.787000e+00 : f32
    %126 = vector.broadcast %cst_56 : f32 to vector<8x128xf32>
    %127 = arith.mulf %126, %119 : vector<8x128xf32>
    %cst_57 = arith.constant 0.137931034 : f32
    %128 = vector.broadcast %cst_57 : f32 to vector<8x128xf32>
    %129 = arith.addf %127, %128 : vector<8x128xf32>
    %cst_58 = arith.constant 8.856000e-03 : f32
    %130 = vector.broadcast %cst_58 : f32 to vector<8x128xf32>
    %131 = arith.cmpf ogt, %119, %130 : vector<8x128xf32>
    %132 = arith.select %131, %125, %129 : vector<8x128xi1>, vector<8x128xf32>
    %133 = arith.subf %104, %117 : vector<8x128xf32>
    %cst_59 = arith.constant 5.000000e+02 : f32
    %134 = vector.broadcast %cst_59 : f32 to vector<8x128xf32>
    %135 = arith.mulf %134, %133 : vector<8x128xf32>
    %136 = arith.subf %117, %132 : vector<8x128xf32>
    %cst_60 = arith.constant 2.000000e+02 : f32
    %137 = vector.broadcast %cst_60 : f32 to vector<8x128xf32>
    %138 = arith.mulf %137, %136 : vector<8x128xf32>
    %139 = math.absf %135 : vector<8x128xf32>
    %140 = math.absf %138 : vector<8x128xf32>
    %141 = arith.maximumf %139, %140 : vector<8x128xf32>
    %142 = arith.minimumf %139, %140 : vector<8x128xf32>
    %cst_61 = arith.constant 0.000000e+00 : f32
    %143 = vector.broadcast %cst_61 : f32 to vector<8x128xf32>
    %144 = arith.cmpf oeq, %141, %143 : vector<8x128xf32>
    %cst_62 = arith.constant 1.000000e+00 : f32
    %145 = vector.broadcast %cst_62 : f32 to vector<8x128xf32>
    %146 = arith.select %144, %145, %141 : vector<8x128xi1>, vector<8x128xf32>
    %147 = arith.divf %142, %146 : vector<8x128xf32>
    %cst_63 = arith.constant 0.414213568 : f32
    %148 = vector.broadcast %cst_63 : f32 to vector<8x128xf32>
    %149 = arith.cmpf ogt, %147, %148 : vector<8x128xf32>
    %cst_64 = arith.constant 1.000000e+00 : f32
    %150 = vector.broadcast %cst_64 : f32 to vector<8x128xf32>
    %151 = arith.subf %147, %150 : vector<8x128xf32>
    %cst_65 = arith.constant 1.000000e+00 : f32
    %152 = vector.broadcast %cst_65 : f32 to vector<8x128xf32>
    %153 = arith.addf %147, %152 : vector<8x128xf32>
    %154 = arith.divf %151, %153 : vector<8x128xf32>
    %155 = arith.select %149, %154, %147 : vector<8x128xi1>, vector<8x128xf32>
    %156 = arith.mulf %155, %155 : vector<8x128xf32>
    %cst_66 = arith.constant 0.0805374458 : f32
    %157 = vector.broadcast %cst_66 : f32 to vector<8x128xf32>
    %158 = arith.mulf %157, %156 : vector<8x128xf32>
    %cst_67 = arith.constant 0.138776854 : f32
    %159 = vector.broadcast %cst_67 : f32 to vector<8x128xf32>
    %160 = arith.subf %158, %159 : vector<8x128xf32>
    %161 = arith.mulf %160, %156 : vector<8x128xf32>
    %cst_68 = arith.constant 0.199777111 : f32
    %162 = vector.broadcast %cst_68 : f32 to vector<8x128xf32>
    %163 = arith.addf %161, %162 : vector<8x128xf32>
    %164 = arith.mulf %163, %156 : vector<8x128xf32>
    %cst_69 = arith.constant 0.333329499 : f32
    %165 = vector.broadcast %cst_69 : f32 to vector<8x128xf32>
    %166 = arith.subf %164, %165 : vector<8x128xf32>
    %167 = arith.mulf %166, %156 : vector<8x128xf32>
    %168 = arith.mulf %167, %155 : vector<8x128xf32>
    %169 = arith.addf %168, %155 : vector<8x128xf32>
    %cst_70 = arith.constant 0.785398185 : f32
    %170 = vector.broadcast %cst_70 : f32 to vector<8x128xf32>
    %171 = arith.addf %169, %170 : vector<8x128xf32>
    %172 = arith.select %149, %171, %169 : vector<8x128xi1>, vector<8x128xf32>
    %173 = arith.cmpf ogt, %140, %139 : vector<8x128xf32>
    %cst_71 = arith.constant 1.57079637 : f32
    %174 = vector.broadcast %cst_71 : f32 to vector<8x128xf32>
    %175 = arith.subf %174, %172 : vector<8x128xf32>
    %176 = arith.select %173, %175, %172 : vector<8x128xi1>, vector<8x128xf32>
    %cst_72 = arith.constant 0.000000e+00 : f32
    %177 = vector.broadcast %cst_72 : f32 to vector<8x128xf32>
    %178 = arith.cmpf olt, %135, %177 : vector<8x128xf32>
    %cst_73 = arith.constant 3.14159274 : f32
    %179 = vector.broadcast %cst_73 : f32 to vector<8x128xf32>
    %180 = arith.subf %179, %176 : vector<8x128xf32>
    %181 = arith.select %178, %180, %176 : vector<8x128xi1>, vector<8x128xf32>
    %cst_74 = arith.constant 0.000000e+00 : f32
    %182 = vector.broadcast %cst_74 : f32 to vector<8x128xf32>
    %183 = arith.cmpf olt, %138, %182 : vector<8x128xf32>
    %cst_75 = arith.constant 0.000000e+00 : f32
    %184 = vector.broadcast %cst_75 : f32 to vector<8x128xf32>
    %185 = arith.subf %184, %181 : vector<8x128xf32>
    %186 = arith.select %183, %185, %181 : vector<8x128xi1>, vector<8x128xf32>
    %cst_76 = arith.constant 0.000000e+00 : f32
    %187 = vector.broadcast %cst_76 : f32 to vector<8x128xf32>
    %188 = arith.cmpf olt, %186, %187 : vector<8x128xf32>
    %cst_77 = arith.constant 6.28318548 : f32
    %189 = vector.broadcast %cst_77 : f32 to vector<8x128xf32>
    %190 = arith.addf %186, %189 : vector<8x128xf32>
    %191 = arith.select %188, %190, %186 : vector<8x128xi1>, vector<8x128xf32>
    %c0_78 = arith.constant 0 : index
    %c0_79 = arith.constant 0 : index
    %c0_80 = arith.constant 0 : index
    %c0_81 = arith.constant 0 : index
    %192 = vector.load %arg3[%c0_78, %c0_79, %c0_80, %c0_81] : memref<1x3x8x128xf32, #tpu.memory_space<vmem>>, vector<1x1x8x128xf32>
    %193 = vector.shape_cast %192 : vector<1x1x8x128xf32> to vector<8x128xf32>
    %cst_82 = arith.constant 1.000000e+00 : f32
    %194 = vector.broadcast %cst_82 : f32 to vector<8x128xf32>
    %195 = arith.addf %193, %194 : vector<8x128xf32>
    %cst_83 = arith.constant 5.000000e-01 : f32
    %196 = vector.broadcast %cst_83 : f32 to vector<8x128xf32>
    %197 = arith.mulf %195, %196 : vector<8x128xf32>
    %c0_84 = arith.constant 0 : index
    %c1_85 = arith.constant 1 : index
    %c0_86 = arith.constant 0 : index
    %c0_87 = arith.constant 0 : index
    %198 = vector.load %arg3[%c0_84, %c1_85, %c0_86, %c0_87] : memref<1x3x8x128xf32, #tpu.memory_space<vmem>>, vector<1x1x8x128xf32>
    %199 = vector.shape_cast %198 : vector<1x1x8x128xf32> to vector<8x128xf32>
    %cst_88 = arith.constant 1.000000e+00 : f32
    %200 = vector.broadcast %cst_88 : f32 to vector<8x128xf32>
    %201 = arith.addf %199, %200 : vector<8x128xf32>
    %cst_89 = arith.constant 5.000000e-01 : f32
    %202 = vector.broadcast %cst_89 : f32 to vector<8x128xf32>
    %203 = arith.mulf %201, %202 : vector<8x128xf32>
    %c0_90 = arith.constant 0 : index
    %c2_91 = arith.constant 2 : index
    %c0_92 = arith.constant 0 : index
    %c0_93 = arith.constant 0 : index
    %204 = vector.load %arg3[%c0_90, %c2_91, %c0_92, %c0_93] : memref<1x3x8x128xf32, #tpu.memory_space<vmem>>, vector<1x1x8x128xf32>
    %205 = vector.shape_cast %204 : vector<1x1x8x128xf32> to vector<8x128xf32>
    %cst_94 = arith.constant 1.000000e+00 : f32
    %206 = vector.broadcast %cst_94 : f32 to vector<8x128xf32>
    %207 = arith.addf %205, %206 : vector<8x128xf32>
    %cst_95 = arith.constant 5.000000e-01 : f32
    %208 = vector.broadcast %cst_95 : f32 to vector<8x128xf32>
    %209 = arith.mulf %207, %208 : vector<8x128xf32>
    %cst_96 = arith.constant 0.0773993805 : f32
    %210 = vector.broadcast %cst_96 : f32 to vector<8x128xf32>
    %211 = arith.mulf %197, %210 : vector<8x128xf32>
    %cst_97 = arith.constant 5.500000e-02 : f32
    %212 = vector.broadcast %cst_97 : f32 to vector<8x128xf32>
    %213 = arith.addf %197, %212 : vector<8x128xf32>
    %cst_98 = arith.constant 0.947867274 : f32
    %214 = vector.broadcast %cst_98 : f32 to vector<8x128xf32>
    %215 = arith.mulf %213, %214 : vector<8x128xf32>
    %cst_99 = arith.constant 9.99999993E-9 : f32
    %216 = vector.broadcast %cst_99 : f32 to vector<8x128xf32>
    %217 = arith.maximumf %215, %216 : vector<8x128xf32>
    %218 = math.log %217 : vector<8x128xf32>
    %cst_100 = arith.constant 2.400000e+00 : f32
    %219 = vector.broadcast %cst_100 : f32 to vector<8x128xf32>
    %220 = arith.mulf %219, %218 : vector<8x128xf32>
    %221 = math.exp %220 : vector<8x128xf32>
    %cst_101 = arith.constant 4.045000e-02 : f32
    %222 = vector.broadcast %cst_101 : f32 to vector<8x128xf32>
    %223 = arith.cmpf ogt, %197, %222 : vector<8x128xf32>
    %224 = arith.select %223, %221, %211 : vector<8x128xi1>, vector<8x128xf32>
    %cst_102 = arith.constant 0.0773993805 : f32
    %225 = vector.broadcast %cst_102 : f32 to vector<8x128xf32>
    %226 = arith.mulf %203, %225 : vector<8x128xf32>
    %cst_103 = arith.constant 5.500000e-02 : f32
    %227 = vector.broadcast %cst_103 : f32 to vector<8x128xf32>
    %228 = arith.addf %203, %227 : vector<8x128xf32>
    %cst_104 = arith.constant 0.947867274 : f32
    %229 = vector.broadcast %cst_104 : f32 to vector<8x128xf32>
    %230 = arith.mulf %228, %229 : vector<8x128xf32>
    %cst_105 = arith.constant 9.99999993E-9 : f32
    %231 = vector.broadcast %cst_105 : f32 to vector<8x128xf32>
    %232 = arith.maximumf %230, %231 : vector<8x128xf32>
    %233 = math.log %232 : vector<8x128xf32>
    %cst_106 = arith.constant 2.400000e+00 : f32
    %234 = vector.broadcast %cst_106 : f32 to vector<8x128xf32>
    %235 = arith.mulf %234, %233 : vector<8x128xf32>
    %236 = math.exp %235 : vector<8x128xf32>
    %cst_107 = arith.constant 4.045000e-02 : f32
    %237 = vector.broadcast %cst_107 : f32 to vector<8x128xf32>
    %238 = arith.cmpf ogt, %203, %237 : vector<8x128xf32>
    %239 = arith.select %238, %236, %226 : vector<8x128xi1>, vector<8x128xf32>
    %cst_108 = arith.constant 0.0773993805 : f32
    %240 = vector.broadcast %cst_108 : f32 to vector<8x128xf32>
    %241 = arith.mulf %209, %240 : vector<8x128xf32>
    %cst_109 = arith.constant 5.500000e-02 : f32
    %242 = vector.broadcast %cst_109 : f32 to vector<8x128xf32>
    %243 = arith.addf %209, %242 : vector<8x128xf32>
    %cst_110 = arith.constant 0.947867274 : f32
    %244 = vector.broadcast %cst_110 : f32 to vector<8x128xf32>
    %245 = arith.mulf %243, %244 : vector<8x128xf32>
    %cst_111 = arith.constant 9.99999993E-9 : f32
    %246 = vector.broadcast %cst_111 : f32 to vector<8x128xf32>
    %247 = arith.maximumf %245, %246 : vector<8x128xf32>
    %248 = math.log %247 : vector<8x128xf32>
    %cst_112 = arith.constant 2.400000e+00 : f32
    %249 = vector.broadcast %cst_112 : f32 to vector<8x128xf32>
    %250 = arith.mulf %249, %248 : vector<8x128xf32>
    %251 = math.exp %250 : vector<8x128xf32>
    %cst_113 = arith.constant 4.045000e-02 : f32
    %252 = vector.broadcast %cst_113 : f32 to vector<8x128xf32>
    %253 = arith.cmpf ogt, %209, %252 : vector<8x128xf32>
    %254 = arith.select %253, %251, %241 : vector<8x128xi1>, vector<8x128xf32>
    %cst_114 = arith.constant 4.124530e-01 : f32
    %255 = vector.broadcast %cst_114 : f32 to vector<8x128xf32>
    %256 = arith.mulf %255, %224 : vector<8x128xf32>
    %cst_115 = arith.constant 3.575800e-01 : f32
    %257 = vector.broadcast %cst_115 : f32 to vector<8x128xf32>
    %258 = arith.mulf %257, %239 : vector<8x128xf32>
    %259 = arith.addf %256, %258 : vector<8x128xf32>
    %cst_116 = arith.constant 1.804230e-01 : f32
    %260 = vector.broadcast %cst_116 : f32 to vector<8x128xf32>
    %261 = arith.mulf %260, %254 : vector<8x128xf32>
    %262 = arith.addf %259, %261 : vector<8x128xf32>
    %cst_117 = arith.constant 2.126710e-01 : f32
    %263 = vector.broadcast %cst_117 : f32 to vector<8x128xf32>
    %264 = arith.mulf %263, %224 : vector<8x128xf32>
    %cst_118 = arith.constant 7.151600e-01 : f32
    %265 = vector.broadcast %cst_118 : f32 to vector<8x128xf32>
    %266 = arith.mulf %265, %239 : vector<8x128xf32>
    %267 = arith.addf %264, %266 : vector<8x128xf32>
    %cst_119 = arith.constant 7.216900e-02 : f32
    %268 = vector.broadcast %cst_119 : f32 to vector<8x128xf32>
    %269 = arith.mulf %268, %254 : vector<8x128xf32>
    %270 = arith.addf %267, %269 : vector<8x128xf32>
    %cst_120 = arith.constant 1.933400e-02 : f32
    %271 = vector.broadcast %cst_120 : f32 to vector<8x128xf32>
    %272 = arith.mulf %271, %224 : vector<8x128xf32>
    %cst_121 = arith.constant 1.191930e-01 : f32
    %273 = vector.broadcast %cst_121 : f32 to vector<8x128xf32>
    %274 = arith.mulf %273, %239 : vector<8x128xf32>
    %275 = arith.addf %272, %274 : vector<8x128xf32>
    %cst_122 = arith.constant 9.502270e-01 : f32
    %276 = vector.broadcast %cst_122 : f32 to vector<8x128xf32>
    %277 = arith.mulf %276, %254 : vector<8x128xf32>
    %278 = arith.addf %275, %277 : vector<8x128xf32>
    %cst_123 = arith.constant 1.05211103 : f32
    %279 = vector.broadcast %cst_123 : f32 to vector<8x128xf32>
    %280 = arith.mulf %262, %279 : vector<8x128xf32>
    %cst_124 = arith.constant 9.99999993E-9 : f32
    %281 = vector.broadcast %cst_124 : f32 to vector<8x128xf32>
    %282 = arith.maximumf %280, %281 : vector<8x128xf32>
    %283 = math.log %282 : vector<8x128xf32>
    %cst_125 = arith.constant 0.333333343 : f32
    %284 = vector.broadcast %cst_125 : f32 to vector<8x128xf32>
    %285 = arith.mulf %283, %284 : vector<8x128xf32>
    %286 = math.exp %285 : vector<8x128xf32>
    %cst_126 = arith.constant 7.787000e+00 : f32
    %287 = vector.broadcast %cst_126 : f32 to vector<8x128xf32>
    %288 = arith.mulf %287, %280 : vector<8x128xf32>
    %cst_127 = arith.constant 0.137931034 : f32
    %289 = vector.broadcast %cst_127 : f32 to vector<8x128xf32>
    %290 = arith.addf %288, %289 : vector<8x128xf32>
    %cst_128 = arith.constant 8.856000e-03 : f32
    %291 = vector.broadcast %cst_128 : f32 to vector<8x128xf32>
    %292 = arith.cmpf ogt, %280, %291 : vector<8x128xf32>
    %293 = arith.select %292, %286, %290 : vector<8x128xi1>, vector<8x128xf32>
    %cst_129 = arith.constant 9.99999993E-9 : f32
    %294 = vector.broadcast %cst_129 : f32 to vector<8x128xf32>
    %295 = arith.maximumf %270, %294 : vector<8x128xf32>
    %296 = math.log %295 : vector<8x128xf32>
    %cst_130 = arith.constant 0.333333343 : f32
    %297 = vector.broadcast %cst_130 : f32 to vector<8x128xf32>
    %298 = arith.mulf %296, %297 : vector<8x128xf32>
    %299 = math.exp %298 : vector<8x128xf32>
    %cst_131 = arith.constant 7.787000e+00 : f32
    %300 = vector.broadcast %cst_131 : f32 to vector<8x128xf32>
    %301 = arith.mulf %300, %270 : vector<8x128xf32>
    %cst_132 = arith.constant 0.137931034 : f32
    %302 = vector.broadcast %cst_132 : f32 to vector<8x128xf32>
    %303 = arith.addf %301, %302 : vector<8x128xf32>
    %cst_133 = arith.constant 8.856000e-03 : f32
    %304 = vector.broadcast %cst_133 : f32 to vector<8x128xf32>
    %305 = arith.cmpf ogt, %270, %304 : vector<8x128xf32>
    %306 = arith.select %305, %299, %303 : vector<8x128xi1>, vector<8x128xf32>
    %cst_134 = arith.constant 0.918417036 : f32
    %307 = vector.broadcast %cst_134 : f32 to vector<8x128xf32>
    %308 = arith.mulf %278, %307 : vector<8x128xf32>
    %cst_135 = arith.constant 9.99999993E-9 : f32
    %309 = vector.broadcast %cst_135 : f32 to vector<8x128xf32>
    %310 = arith.maximumf %308, %309 : vector<8x128xf32>
    %311 = math.log %310 : vector<8x128xf32>
    %cst_136 = arith.constant 0.333333343 : f32
    %312 = vector.broadcast %cst_136 : f32 to vector<8x128xf32>
    %313 = arith.mulf %311, %312 : vector<8x128xf32>
    %314 = math.exp %313 : vector<8x128xf32>
    %cst_137 = arith.constant 7.787000e+00 : f32
    %315 = vector.broadcast %cst_137 : f32 to vector<8x128xf32>
    %316 = arith.mulf %315, %308 : vector<8x128xf32>
    %cst_138 = arith.constant 0.137931034 : f32
    %317 = vector.broadcast %cst_138 : f32 to vector<8x128xf32>
    %318 = arith.addf %316, %317 : vector<8x128xf32>
    %cst_139 = arith.constant 8.856000e-03 : f32
    %319 = vector.broadcast %cst_139 : f32 to vector<8x128xf32>
    %320 = arith.cmpf ogt, %308, %319 : vector<8x128xf32>
    %321 = arith.select %320, %314, %318 : vector<8x128xi1>, vector<8x128xf32>
    %322 = arith.subf %293, %306 : vector<8x128xf32>
    %cst_140 = arith.constant 5.000000e+02 : f32
    %323 = vector.broadcast %cst_140 : f32 to vector<8x128xf32>
    %324 = arith.mulf %323, %322 : vector<8x128xf32>
    %325 = arith.subf %306, %321 : vector<8x128xf32>
    %cst_141 = arith.constant 2.000000e+02 : f32
    %326 = vector.broadcast %cst_141 : f32 to vector<8x128xf32>
    %327 = arith.mulf %326, %325 : vector<8x128xf32>
    %328 = math.absf %324 : vector<8x128xf32>
    %329 = math.absf %327 : vector<8x128xf32>
    %330 = arith.maximumf %328, %329 : vector<8x128xf32>
    %331 = arith.minimumf %328, %329 : vector<8x128xf32>
    %cst_142 = arith.constant 0.000000e+00 : f32
    %332 = vector.broadcast %cst_142 : f32 to vector<8x128xf32>
    %333 = arith.cmpf oeq, %330, %332 : vector<8x128xf32>
    %cst_143 = arith.constant 1.000000e+00 : f32
    %334 = vector.broadcast %cst_143 : f32 to vector<8x128xf32>
    %335 = arith.select %333, %334, %330 : vector<8x128xi1>, vector<8x128xf32>
    %336 = arith.divf %331, %335 : vector<8x128xf32>
    %cst_144 = arith.constant 0.414213568 : f32
    %337 = vector.broadcast %cst_144 : f32 to vector<8x128xf32>
    %338 = arith.cmpf ogt, %336, %337 : vector<8x128xf32>
    %cst_145 = arith.constant 1.000000e+00 : f32
    %339 = vector.broadcast %cst_145 : f32 to vector<8x128xf32>
    %340 = arith.subf %336, %339 : vector<8x128xf32>
    %cst_146 = arith.constant 1.000000e+00 : f32
    %341 = vector.broadcast %cst_146 : f32 to vector<8x128xf32>
    %342 = arith.addf %336, %341 : vector<8x128xf32>
    %343 = arith.divf %340, %342 : vector<8x128xf32>
    %344 = arith.select %338, %343, %336 : vector<8x128xi1>, vector<8x128xf32>
    %345 = arith.mulf %344, %344 : vector<8x128xf32>
    %cst_147 = arith.constant 0.0805374458 : f32
    %346 = vector.broadcast %cst_147 : f32 to vector<8x128xf32>
    %347 = arith.mulf %346, %345 : vector<8x128xf32>
    %cst_148 = arith.constant 0.138776854 : f32
    %348 = vector.broadcast %cst_148 : f32 to vector<8x128xf32>
    %349 = arith.subf %347, %348 : vector<8x128xf32>
    %350 = arith.mulf %349, %345 : vector<8x128xf32>
    %cst_149 = arith.constant 0.199777111 : f32
    %351 = vector.broadcast %cst_149 : f32 to vector<8x128xf32>
    %352 = arith.addf %350, %351 : vector<8x128xf32>
    %353 = arith.mulf %352, %345 : vector<8x128xf32>
    %cst_150 = arith.constant 0.333329499 : f32
    %354 = vector.broadcast %cst_150 : f32 to vector<8x128xf32>
    %355 = arith.subf %353, %354 : vector<8x128xf32>
    %356 = arith.mulf %355, %345 : vector<8x128xf32>
    %357 = arith.mulf %356, %344 : vector<8x128xf32>
    %358 = arith.addf %357, %344 : vector<8x128xf32>
    %cst_151 = arith.constant 0.785398185 : f32
    %359 = vector.broadcast %cst_151 : f32 to vector<8x128xf32>
    %360 = arith.addf %358, %359 : vector<8x128xf32>
    %361 = arith.select %338, %360, %358 : vector<8x128xi1>, vector<8x128xf32>
    %362 = arith.cmpf ogt, %329, %328 : vector<8x128xf32>
    %cst_152 = arith.constant 1.57079637 : f32
    %363 = vector.broadcast %cst_152 : f32 to vector<8x128xf32>
    %364 = arith.subf %363, %361 : vector<8x128xf32>
    %365 = arith.select %362, %364, %361 : vector<8x128xi1>, vector<8x128xf32>
    %cst_153 = arith.constant 0.000000e+00 : f32
    %366 = vector.broadcast %cst_153 : f32 to vector<8x128xf32>
    %367 = arith.cmpf olt, %324, %366 : vector<8x128xf32>
    %cst_154 = arith.constant 3.14159274 : f32
    %368 = vector.broadcast %cst_154 : f32 to vector<8x128xf32>
    %369 = arith.subf %368, %365 : vector<8x128xf32>
    %370 = arith.select %367, %369, %365 : vector<8x128xi1>, vector<8x128xf32>
    %cst_155 = arith.constant 0.000000e+00 : f32
    %371 = vector.broadcast %cst_155 : f32 to vector<8x128xf32>
    %372 = arith.cmpf olt, %327, %371 : vector<8x128xf32>
    %cst_156 = arith.constant 0.000000e+00 : f32
    %373 = vector.broadcast %cst_156 : f32 to vector<8x128xf32>
    %374 = arith.subf %373, %370 : vector<8x128xf32>
    %375 = arith.select %372, %374, %370 : vector<8x128xi1>, vector<8x128xf32>
    %cst_157 = arith.constant 0.000000e+00 : f32
    %376 = vector.broadcast %cst_157 : f32 to vector<8x128xf32>
    %377 = arith.cmpf olt, %375, %376 : vector<8x128xf32>
    %cst_158 = arith.constant 6.28318548 : f32
    %378 = vector.broadcast %cst_158 : f32 to vector<8x128xf32>
    %379 = arith.addf %375, %378 : vector<8x128xf32>
    %380 = arith.select %377, %379, %375 : vector<8x128xi1>, vector<8x128xf32>
    %381 = arith.subf %191, %380 : vector<8x128xf32>
    %382 = math.absf %381 : vector<8x128xf32>
    %383 = vector.shape_cast %382 : vector<8x128xf32> to vector<1x8x128xf32>
    %cst_159 = arith.constant dense<0.000000e+00> : vector<8x128xf32>
    %384 = vector.multi_reduction <add>, %383, %cst_159 [0] : vector<1x8x128xf32> to vector<8x128xf32>
    %c0_160 = arith.constant 0 : index
    %c0_161 = arith.constant 0 : index
    %c0_162 = arith.constant 0 : index
    %385 = vector.load %arg4[%c0_160, %c0_161, %c0_162] : memref<1x8x128xf32, #tpu.memory_space<vmem>>, vector<1x8x128xf32>
    %386 = vector.shape_cast %384 : vector<8x128xf32> to vector<1x8x128xf32>
    %387 = arith.addf %385, %386 : vector<1x8x128xf32>
    %c0_163 = arith.constant 0 : index
    %c0_164 = arith.constant 0 : index
    %c0_165 = arith.constant 0 : index
    %388 = vector.load %arg4[%c0_163, %c0_164, %c0_165] : memref<1x8x128xf32, #tpu.memory_space<vmem>>, vector<1x8x128xf32>
    tpu.vector_store %arg4[%c0_163, %c0_164, %c0_165], %387 {strides = array<i32>} : memref<1x8x128xf32, #tpu.memory_space<vmem>>, vector<1x8x128xf32>,
    return
  }
  func.func @transform_0(%arg0: i32, %arg1: i32) -> (i32, i32, i32, i32) {
    %c1_i32 = arith.constant 1 : i32
    %0 = arith.muli %arg0, %c1_i32 : i32
    %1 = arith.addi %0, %arg1 : i32
    %c0_i32 = arith.constant 0 : i32
    %c0_i32_0 = arith.constant 0 : i32
    %c0_i32_1 = arith.constant 0 : i32
    %c0_i32_2 = arith.constant 0 : i32
    return %c0_i32, %c0_i32_0, %1, %c0_i32_1 : i32, i32, i32, i32
  }
  func.func @transform_1(%arg0: i32, %arg1: i32) -> (i32, i32, i32, i32) {
    %c1_i32 = arith.constant 1 : i32
    %0 = arith.muli %arg0, %c1_i32 : i32
    %1 = arith.addi %0, %arg1 : i32
    %c0_i32 = arith.constant 0 : i32
    %c0_i32_0 = arith.constant 0 : i32
    %c0_i32_1 = arith.constant 0 : i32
    %c0_i32_2 = arith.constant 0 : i32
    return %c0_i32, %c0_i32_0, %1, %c0_i32_1 : i32, i32, i32, i32
  }
  func.func @transform_2(%arg0: i32, %arg1: i32) -> (i32, i32, i32) {
    %c0_i32 = arith.constant 0 : i32
    %c0_i32_0 = arith.constant 0 : i32
    %c0_i32_1 = arith.constant 0 : i32
    return %arg0, %c0_i32, %c0_i32_0 : i32, i32, i32
  }
}

</mosaic_0001>

<bundles_post_ra>
// kernel: tpu_custom_call.1
= control target key start
LH: loop header
LB: loop body
LE: loop exit
PB: predicated region body
PF: predicated region fallthrough
CT: control target
= control target key end

     0   :  { %7 = vsyncpa [#allocation3], 0  ;;  %s1269_s0 = inlined_call_operand.hbm [shape: f32[2,3,16,128], index: 0, kind: input, shape index: {}]   ;;  %s1270_s1 = inlined_call_operand.hbm [shape: f32[2,3,16,128], index: 1, kind: input, shape index: {}]   ;;  %s1271_s2 = inlined_call_operand.hbm [shape: f32[2,8,128], index: 2, kind: output, shape index: {}]  }
   0x1   :  { %9 = vsyncpa [#allocation3 + $0x1], 0 }
   0x2   :  { %10 = vsyncpa [#allocation6], 0 }
   0x3   :  { %12 = vsyncpa [#allocation6 + $0x1], 0 }
   0x4   :  { %13 = vsyncpa [#allocation4], 0 }
   0x5   :  { %15 = vsyncpa [#allocation4 + $0x1], 0  ;;  %s935_s9 = smov 0   ;;  %s937_s10 = smov 0  }
   0x6   :  { %s939_s11 = smov 0   ;;  %s941_s12 = smov 0  }
   0x7   :  { %s943_s13 = smov 0   ;;  %s945_s14 = smov 0  }
   0x8 LB: > { %s614_s15 = sadd.s32 4294967295, %s912_s14   ;;  %s615_s16 = sadd.s32 4294967294, %s912_s14   ;;  %s912_s14 = sphi %s945_s14, %s21_s14   ;;  %s908_s13 = sphi %s943_s13, %s1288_s13   ;;  %s904_s12 = sphi %s941_s12, %s1287_s12   ;;  %s900_s11 = sphi %s939_s11, %s1286_s11   ;;  %s896_s10 = sphi %s937_s10, %s1285_s10   ;;  %s892_s9 = sphi %s935_s9, %s1284_s9  }
   0x9   : > { %s33_s17 = sadd.s32 1, %s908_s13  ;;  %s42_s18 = sadd.s32 1, %s900_s11 }
   0xa   : > { %p35_p0 = scmp.ge.s32.totalorder %s33_s17, 2  ;;  %p49_p1 = scmp.ne.s32.totalorder %s900_s11, %s896_s10 }
   0xb   : > { %p50_p2 = scmp.eq.s32.totalorder %s912_s14, 0  ;;  %p55_p3 = scmp.ne.s32.totalorder %s896_s10, %s892_s9 }
   0xc   : > { %s1290_s17 = smov (%p35_p0, %s33_s17), 0  ;;  %p56_p5 = scmp.eq.s32.totalorder %s614_s15, 0 }
   0xd   : > { %p976_p4 = por %p50_p2, %p49_p1  ;;  %s39_s20 = ssub.s32 %s908_s13, %s1290_s17 }
   0xe   : > { %p107_p6 = scmp.eq.s32.totalorder %s614_s15, 1  ;;  %p40_p7 = scmp.eq.s32.totalorder %s39_s20, 0 }
   0xf   : > { %p982_p8 = por %p56_p5, %p55_p3  ;;  %p113_p10 = scmp.eq.s32.totalorder %s615_s16, 1 }
  0x10   : > { %p986_p9 = por %p107_p6, %p49_p1  ;;  %p656_p13 = scmp.lt.s32.totalorder %s912_s14, 2 }
  0x11   : > { %s1275_s21 = scalar_select %p982_p8, 1, 0 }
  0x12   : > { %s1276_s22 = scalar_select %p986_p9, 1, 0 }
  0x13   : > { %s991_s23 = scalar_select %p40_p7, %s900_s11, %s42_s18  }
  0x14   : > { %p993_p11 = por %p113_p10, %p55_p3  ;;  %s1000_s25 = sand.u32 1, %s900_s11  }
  0x15   : > { %s636_s26 = smul.u32 24, %s1000_s25  ;;  %s618_s27 = sshll.u32 %s908_s13, 7 }
  0x16   : > { %s1277_s24 = scalar_select %p993_p11, 1, 0 }
  0x17   : > { %p1006_p0 = pnand %p656_p13, %p976_p4  ;;  %s1015_s3 = scalar_lea.hbm %s1269_s0, %s618_s27 }
  0x18   : > { %s137_s4 = scalar_lea.vmem [#allocation2], %s636_s26  ;;  %s134_s6 = scalar_lea.sflag [#allocation3], %s1000_s25 }
  0x19   : > { %s144_s5 = sshll.u32 %s137_s4, 4  ;;  %s766_s7 = scalar_lea.hbm %s1015_s3, 384  ;;  %s1019_s5 = int_to_ptr.vmem [resolvable:$true] %s144_s5 }
  0x1a   : > { %p767_p1 = scmp.ne.s32.totalorder %s1015_s3, %s766_s7  ;;  %p768_p2 = pneg %p1006_p0 }
  0x1b   : > { %s771_s16 = scalar_lea.hbm %s1269_s0, 1536  ;;  %p772_p5 = scmp.lt.u32.totalorder %s1015_s3, %s1269_s0 }
  0x1c   : > { %p769_p3 = pnand %p768_p2, %p767_p1  ;;  %p773_p6 = scmp.lt.u32.totalorder %s771_s16, %s766_s7 }
  0x1d   : > { %p775_p10 = scmp.lt.u32.totalorder %s766_s7, %s1015_s3 }
  0x1e   : > { %p770_p4 = pneg %p769_p3  ;;  %p774_p7 = por %p773_p6, %p772_p5 }
  0x20   : > { %p776_p13 = por %p775_p10, %p774_p7 }
  0x22   : > { %p777_p12 = pnand %p776_p13, %p770_p4 }
  0x24   : > { %780 = shalt.err (!%p777_p12)
}
  0x25   : > { %s781_s20 = scalar_lea.vmem %s1019_s5, 384  ;;  %s914_s29 = smov [#allocation2]  }
  0x26   : > { %p782_p1 = scmp.ne.s32.totalorder %s1019_s5, %s781_s20  ;;  %s786_s30 = sshll.u32 %s914_s29, 4  ;;  %s787_s30 = int_to_ptr.vmem [resolvable:$false] %s786_s30 }
  0x27   : > { %s788_s4 = scalar_lea.vmem %s787_s30, 768  ;;  %p789_p9 = scmp.lt.s32.totalorder %s1019_s5, %s787_s30 }
  0x28   : > { %p784_p3 = pnand %p782_p1, %p768_p2  ;;  %p790_p5 = scmp.lt.s32.totalorder %s788_s4, %s781_s20 }
  0x2a   : > { %p785_p11 = pneg %p784_p3  ;;  %p791_p6 = por %p790_p5, %p789_p9 }
  0x2c   : > { %p792_p7 = pnand %p791_p6, %p785_p11 }
  0x2e   : > { %795 = shalt.err (!%p792_p7)
}
  0x2f   : > { %s915_s7 = smov 256   ;;  %s916_s8 = smov 128  }
  0x30   : > { %s917_s15 = smov 8   ;;  %p620_p9 = scmp.ge.s32.totalorder %s912_s14, 1 }
  0x31   : > { %648 = dma.hbm_to_vmem [thread:$0]  (!%p1006_p0), %s1015_s3, 384, %s1019_s5, %s134_s6, %s915_s7, %s916_s8, %s917_s15  }
  0x32   : > { %p173_p11 = scmp.lt.s32.totalorder %s912_s14, 3  ;;  %s1063_s20 = scalar_lea.hbm %s1270_s1, %s618_s27 }
  0x33   : > { %s158_s29 = scalar_lea.vmem [#allocation5], %s636_s26  ;;  %s155_s3 = scalar_lea.sflag [#allocation6], %s1000_s25 }
  0x34   : > { %p1054_p12 = pnand %p620_p9, %p173_p11  ;;  %s165_s30 = sshll.u32 %s158_s29, 4  ;;  %s1067_s30 = int_to_ptr.vmem [resolvable:$true] %s165_s30 }
  0x35   : > { %s796_s5 = scalar_lea.hbm %s1063_s20, 384  ;;  %s801_s27 = scalar_lea.hbm %s1270_s1, 1536 }
  0x36   : > { %p797_p4 = scmp.ne.s32.totalorder %s1063_s20, %s796_s5  ;;  %p802_p1 = scmp.lt.u32.totalorder %s1063_s20, %s1270_s1 }
  0x37   : > { %p803_p3 = scmp.lt.u32.totalorder %s801_s27, %s796_s5  ;;  %p805_p6 = scmp.lt.u32.totalorder %s796_s5, %s1063_s20 }
  0x38   : > { %p799_p10 = pnand %p797_p4, %p768_p2 }
  0x39   : > { %p804_p5 = por %p803_p3, %p802_p1 }
  0x3a   : > { %p800_p13 = pneg %p799_p10 }
  0x3b   : > { %p806_p7 = por %p805_p6, %p804_p5 }
  0x3d   : > { %p807_p9 = pnand %p806_p7, %p800_p13 }
  0x3f   : > { %810 = shalt.err (!%p807_p9)
}
  0x40   : > { %s811_s26 = scalar_lea.vmem %s1067_s30, 384  ;;  %s918_s29 = smov [#allocation5]  }
  0x41   : > { %p812_p11 = scmp.ne.s32.totalorder %s1067_s30, %s811_s26  ;;  %s816_s6 = sshll.u32 %s918_s29, 4  ;;  %s817_s6 = int_to_ptr.vmem [resolvable:$false] %s816_s6 }
  0x42   : > { %s818_s4 = scalar_lea.vmem %s817_s6, 768  ;;  %p819_p8 = scmp.lt.s32.totalorder %s1067_s30, %s817_s6 }
  0x43   : > { %p814_p4 = pnand %p812_p11, %p768_p2  ;;  %p820_p1 = scmp.lt.s32.totalorder %s818_s4, %s811_s26 }
  0x45   : > { %p815_p10 = pneg %p814_p4  ;;  %p821_p3 = por %p820_p1, %p819_p8 }
  0x47   : > { %p822_p5 = pnand %p821_p3, %p815_p10 }
  0x49   : > { %825 = shalt.err (!%p822_p5)
}
  0x4a   : > { %651 = dma.hbm_to_vmem [thread:$0]  (!%p1006_p0), %s1063_s20, 384, %s1067_s30, %s155_s3, %s915_s7, %s916_s8, %s917_s15  }
  0x4b   : > { %177 = sbr.rel (%p1054_p12) target bundleno = 263 (0x107), region = 28  ;;  %s1101_s5 = sand.u32 (!%p1054_p12), 1, %s896_s10  }
  0x4c   : > { %s638_s27 = smul.u32 (!%p1054_p12), 24, %s1101_s5  ;;  %s180_s18 = scalar_lea.sflag (!%p1054_p12), [#allocation3], %s1101_s5 }
  0x4d   : > { %p1280_p8 = scmp.ne.s32.totalorder (!%p1054_p12), %s1275_s21, 0 }
  0x4e   : > { %s183_s28 = scalar_lea.vmem (!%p1054_p12), [#allocation2], %s638_s27 }
  0x52   : > { %879 = dma.done.wait (%p1280_p8), %s180_s18, 384  }
  0x53   : > { %881 = vsyncadd (%p1280_p8), %s180_s18, 4294966912  ;;  %s189_s25 = scalar_lea.sflag [#allocation6], %s1101_s5  ;;  %s192_s7 = scalar_lea.vmem [#allocation5], %s638_s27 }
  0x54   : > { %883 = dma.done.wait (%p1280_p8), %s189_s25, 384  }
  0x55   : > { %885 = vsyncadd (%p1280_p8), %s189_s25, 4294966912  ;;  %v225_v0 = vld [vmem:[%s183_s28] sm:$0xff]  ;;  %v622_v1 = vld [vmem:[%s183_s28 + $0x8] sm:$0xff]  ;;  %s621_s21 = sshll.u32 %s1101_s5, 3  ;;  %s633_s8 = sshll.u32 %s904_s12, 7 }
  0x56   : > { %v623_v2 = vld [vmem:[%s183_s28 + $0x10] sm:$0xff]  ;;  %v226_v3 = vadd.f32 1.0, %v225_v0  ;;  %v230_v4 = vadd.f32 1.0, %v622_v1  ;;  %v627_v7 = vld [vmem:[%s192_s7 + $0x8] sm:$0xff]  ;;  %v628_v8 = vld [vmem:[%s192_s7 + $0x10] sm:$0xff]  ;;  %s217_s15 = scalar_lea.vmem [#allocation7], %s621_s21  ;;  %s1220_s3 = scalar_lea.hbm %s1271_s2, %s633_s8 }
  0x57   : > { %v234_v5 = vadd.f32 1.0, %v623_v2  ;;  %v358_v6 = vld [vmem:[%s192_s7] sm:$0xff]  ;;  %v363_v13 = vadd.f32 1.0, %v627_v7  ;;  %v367_v14 = vadd.f32 1.0, %v628_v8  ;;  %s511_s16 = sshll.u32 %s217_s15, 4  ;;  %s498_s19 = scalar_lea.sflag [#allocation4], %s1101_s5  ;;  %s1222_s16 = int_to_ptr.vmem [resolvable:$true] %s511_s16 }
  0x58   : > { %v359_v9 = vadd.f32 1.0, %v358_v6  ;;  %v1114_v10 = vmul.f32 0.5, %v226_v3  ;;  %v1116_v11 = vmul.f32 0.5, %v230_v4  ;;  %s826_s26 = scalar_lea.vmem %s1222_s16, 128  ;;  %p1281_p2 = scmp.ne.s32.totalorder %s1276_s22, 0 }
  0x59   : > { %v1118_v12 = vmul.f32 0.5, %v234_v5  ;;  %v1125_v20 = vmul.f32 0.5, %v363_v13  ;;  %v1127_v22 = vmul.f32 0.5, %v367_v14  ;;  %p827_p0 = scmp.ne.s32.totalorder %s1222_s16, %s826_s26  ;;  %s919_s12 = smov [#allocation7]  }
  0x5a   : > { %v237_v15 = vadd.f32 0.055, %v1114_v10  ;;  %v1121_v16 = vmul.f32 0.5, %v359_v9  ;;  %v248_v17 = vadd.f32 0.055, %v1116_v11  ;;  %s830_s29 = sshll.u32 %s919_s12, 4  ;;  %s831_s29 = int_to_ptr.vmem [resolvable:$false] %s830_s29 }
  0x5b   : > { %v259_v19 = vadd.f32 0.055, %v1118_v12  ;;  %v381_v29 = vadd.f32 0.055, %v1125_v20  ;;  %v392_v30 = vadd.f32 0.055, %v1127_v22  ;;  %p828_p12 = pnand %p827_p0, %p1281_p2  ;;  %p833_p6 = scmp.lt.s32.totalorder %s1222_s16, %s831_s29 }
  0x5c   : > { %v238_v18 = vmul.f32 0.9478673, %v237_v15  ;;  %v249_v21 = vmul.f32 0.9478673, %v248_v17  ;;  %v370_v25 = vadd.f32 0.055, %v1121_v16 }
  0x5d   : > { %v260_v24 = vmul.f32 0.9478673, %v259_v19  ;;  %v382_v32 = vmul.f32 0.9478673, %v381_v29  ;;  %v393_v33 = vmul.f32 0.9478673, %v392_v30  ;;  %p829_p13 = pneg %p828_p12 }
  0x5e   : > { %v239_v23 = vmax.f32 %v238_v18, 1e-08  ;;  %v250_v26 = vmax.f32 %v249_v21, 1e-08  ;;  %v371_v28 = vmul.f32 0.9478673, %v370_v25 }
  0x5f   : > { %v261_v27 = vmax.f32 %v260_v24, 1e-08  ;;  %v383_v34 = vmax.f32 %v382_v32, 1e-08  ;;  %v394_v35 = vmax.f32 %v393_v33, 1e-08 }
  0x60   : > { %710 = vlog2.f32 %v239_v23  ;;  %v372_v31 = vmax.f32 %v371_v28, 1e-08  ;;  %v236_v60 = vmul.f32 0.07739938, %v1114_v10  ;;  %vm245_vm0 = vcmp.gt.f32.partialorder %v1114_v10, 0.04045 }
  0x61   : > { %712 = vlog2.f32 %v250_v26  ;;  %v247_v61 = vmul.f32 0.07739938, %v1116_v11  ;;  %vm256_vm1 = vcmp.gt.f32.partialorder %v1116_v11, 0.04045  ;;  %v258_v62 = vmul.f32 0.07739938, %v1118_v12 }
  0x62   : > { %714 = vlog2.f32 %v261_v27  ;;  %vm267_vm2 = vcmp.gt.f32.partialorder %v1118_v12, 0.04045  ;;  %v369_v0 = vmul.f32 0.07739938, %v1121_v16  ;;  %vm378_vm3 = vcmp.gt.f32.partialorder %v1121_v16, 0.04045 }
  0x63   : > { %716 = vlog2.f32 %v372_v31  ;;  %v380_v1 = vmul.f32 0.07739938, %v1125_v20  ;;  %vm389_vm4 = vcmp.gt.f32.partialorder %v1125_v20, 0.04045  ;;  %v391_v4 = vmul.f32 0.07739938, %v1127_v22 }
  0x64   : > { %718 = vlog2.f32 %v383_v34  ;;  %vm400_vm5 = vcmp.gt.f32.partialorder %v1127_v22, 0.04045  ;;  %s832_s6 = scalar_lea.vmem %s831_s29, 256 }
  0x65   : > { %720 = vlog2.f32 %v394_v35  ;;  %p834_p7 = scmp.lt.s32.totalorder %s832_s6, %s826_s26 }
  0x67   : > { %p835_p9 = por %p834_p7, %p833_p6 }
  0x69   : > { %p836_p11 = pnand %p835_p9, %p829_p13 }
  0x6a   : > { %v711_v36 = vpop.eup %710 }
  0x6b   : > { %v713_v37 = vpop.eup %712  ;;  %v241_v38 = vmul.f32 0.6931472, %v711_v36 }
  0x6c   : > { %v715_v39 = vpop.eup %714  ;;  %v252_v40 = vmul.f32 0.6931472, %v713_v37 }
  0x6d   : > { %v242_v41 = vmul.f32 2.4, %v241_v38  ;;  %v263_v42 = vmul.f32 0.6931472, %v715_v39  ;;  %v717_v43 = vpop.eup %716 }
  0x6e   : > { %v253_v44 = vmul.f32 2.4, %v252_v40  ;;  %v374_v47 = vmul.f32 0.6931472, %v717_v43  ;;  %v719_v48 = vpop.eup %718 }
  0x6f   : > { %v243_v45 = vmul.f32 1.442695, %v242_v41  ;;  %v264_v46 = vmul.f32 2.4, %v263_v42  ;;  %v721_v50 = vpop.eup %720  ;;  %v385_v53 = vmul.f32 0.6931472, %v719_v48 }
  0x70   : > { %v254_v49 = vmul.f32 1.442695, %v253_v44  ;;  %v375_v52 = vmul.f32 2.4, %v374_v47  ;;  %v396_v54 = vmul.f32 0.6931472, %v721_v50 }
  0x71   : > { %722 = vpow2.f32 %v243_v45  ;;  %v265_v51 = vmul.f32 1.442695, %v264_v46  ;;  %v386_v56 = vmul.f32 2.4, %v385_v53 }
  0x72   : > { %724 = vpow2.f32 %v254_v49  ;;  %v376_v55 = vmul.f32 1.442695, %v375_v52  ;;  %v397_v57 = vmul.f32 2.4, %v396_v54 }
  0x73   : > { %726 = vpow2.f32 %v265_v51  ;;  %v387_v58 = vmul.f32 1.442695, %v386_v56 }
  0x74   : > { %728 = vpow2.f32 %v376_v55  ;;  %v398_v59 = vmul.f32 1.442695, %v397_v57 }
  0x75   : > { %730 = vpow2.f32 %v387_v58 }
  0x76   : > { %732 = vpow2.f32 %v398_v59 }
  0x7b   : > { %v723_v63 = vpop.eup %722 }
  0x7c   : > { %v725_v2 = vpop.eup %724  ;;  %v246_v3 = vsel %vm245_vm0, %v723_v63, %v236_v60 }
  0x7d   : > { %v727_v5 = vpop.eup %726  ;;  %v257_v6 = vsel %vm256_vm1, %v725_v2, %v247_v61  ;;  %v269_v7 = vmul.f32 0.412453, %v246_v3  ;;  %v274_v8 = vmul.f32 0.212671, %v246_v3  ;;  %v279_v9 = vmul.f32 0.019334, %v246_v3 }
  0x7e   : > { %v268_v10 = vsel %vm267_vm2, %v727_v5, %v258_v62  ;;  %v270_v11 = vmul.f32 0.35758, %v257_v6  ;;  %v275_v12 = vmul.f32 0.71516, %v257_v6  ;;  %v280_v13 = vmul.f32 0.119193, %v257_v6  ;;  %v729_v14 = vpop.eup %728 }
  0x7f   : > { %v272_v15 = vmul.f32 0.180423, %v268_v10  ;;  %v277_v17 = vmul.f32 0.072169, %v268_v10  ;;  %v282_v18 = vmul.f32 0.950227, %v268_v10  ;;  %v379_v24 = vsel %vm378_vm3, %v729_v14, %v369_v0  ;;  %v731_v25 = vpop.eup %730 }
  0x80   : > { %v271_v19 = vadd.f32 %v270_v11, %v269_v7  ;;  %v276_v21 = vadd.f32 %v275_v12, %v274_v8  ;;  %v281_v23 = vadd.f32 %v280_v13, %v279_v9  ;;  %v402_v26 = vmul.f32 0.412453, %v379_v24  ;;  %v733_v27 = vpop.eup %732 }
  0x81   : > { %v390_v31 = vsel %vm389_vm4, %v731_v25, %v380_v1  ;;  %v401_v32 = vsel %vm400_vm5, %v733_v27, %v391_v4  ;;  %v407_v34 = vmul.f32 0.212671, %v379_v24  ;;  %v412_v35 = vmul.f32 0.019334, %v379_v24 }
  0x82   : > { %v273_v28 = vadd.f32 %v272_v15, %v271_v19  ;;  %v1146_v29 = vadd.f32 %v277_v17, %v276_v21  ;;  %v283_v30 = vadd.f32 %v282_v18, %v281_v23  ;;  %v403_v33 = vmul.f32 0.35758, %v390_v31 }
  0x83   : > { %v408_v37 = vmul.f32 0.71516, %v390_v31  ;;  %v405_v40 = vmul.f32 0.180423, %v401_v32  ;;  %v413_v41 = vmul.f32 0.119193, %v390_v31 }
  0x84   : > { %v1152_v36 = vmul.f32 1.052111, %v273_v28  ;;  %v295_v16 = vmax.f32 %v1146_v29, 1e-08  ;;  %v1155_v38 = vmul.f32 0.91841704, %v283_v30  ;;  %v404_v39 = vadd.f32 %v403_v33, %v402_v26 }
  0x85   : > { %v409_v43 = vadd.f32 %v408_v37, %v407_v34  ;;  %v410_v44 = vmul.f32 0.072169, %v401_v32  ;;  %v414_v45 = vadd.f32 %v413_v41, %v412_v35  ;;  %v415_v46 = vmul.f32 0.950227, %v401_v32 }
  0x86   : > { %v285_v42 = vmax.f32 %v1152_v36, 1e-08  ;;  %734 = vlog2.f32 %v295_v16  ;;  %v306_v20 = vmax.f32 %v1155_v38, 1e-08  ;;  %v406_v22 = vadd.f32 %v405_v40, %v404_v39 }
  0x87   : > { %v1161_v48 = vadd.f32 %v410_v44, %v409_v43  ;;  %v416_v49 = vadd.f32 %v415_v46, %v414_v45  ;;  %v301_v5 = vmul.f32 7.787, %v1146_v29  ;;  %v291_v9 = vmul.f32 7.787, %v1152_v36 }
  0x88   : > { %736 = vlog2.f32 %v285_v42  ;;  %v1159_v47 = vmul.f32 1.052111, %v406_v22  ;;  %v312_v11 = vmul.f32 7.787, %v1155_v38  ;;  %vm303_vm6 = vcmp.gt.f32.partialorder %v1146_v29, 0.008856 }
  0x89   : > { %738 = vlog2.f32 %v306_v20  ;;  %v428_v51 = vmax.f32 %v1161_v48, 1e-08  ;;  %v1165_v52 = vmul.f32 0.91841704, %v416_v49  ;;  %v302_v14 = vadd.f32 0.13793103, %v301_v5 }
  0x8a   : > { %v418_v50 = vmax.f32 %v1159_v47, 1e-08  ;;  %v292_v18 = vadd.f32 0.13793103, %v291_v9  ;;  %vm293_vm7 = vcmp.gt.f32.partialorder %v1152_v36, 0.008856 }
  0x8b   : > { %v439_v54 = vmax.f32 %v1165_v52, 1e-08  ;;  %v313_v21 = vadd.f32 0.13793103, %v312_v11  ;;  %vm314_vm8 = vcmp.gt.f32.partialorder %v1155_v38, 0.008856 }
  0x8c   : > { %740 = vlog2.f32 %v418_v50  ;;  %v424_v25 = vmul.f32 7.787, %v1159_v47  ;;  %v434_v27 = vmul.f32 7.787, %v1161_v48  ;;  %v445_v34 = vmul.f32 7.787, %v1165_v52 }
  0x8d   : > { %742 = vlog2.f32 %v428_v51  ;;  %vm426_vm9 = vcmp.gt.f32.partialorder %v1159_v47, 0.008856  ;;  %vm436_vm10 = vcmp.gt.f32.partialorder %v1161_v48, 0.008856  ;;  %vm447_vm11 = vcmp.gt.f32.partialorder %v1165_v52, 0.008856 }
  0x8e   : > { %744 = vlog2.f32 %v439_v54  ;;  %v425_v33 = vadd.f32 0.13793103, %v424_v25  ;;  %v435_v36 = vadd.f32 0.13793103, %v434_v27  ;;  %v446_v42 = vadd.f32 0.13793103, %v445_v34 }
  0x90   : > { %v735_v53 = vpop.eup %734 }
  0x91   : > { %v297_v55 = vmul.f32 0.6931472, %v735_v53 }
  0x92   : > { %v737_v56 = vpop.eup %736 }
  0x93   : > { %v739_v57 = vpop.eup %738  ;;  %v287_v58 = vmul.f32 0.6931472, %v737_v56  ;;  %v298_v59 = vmul.f32 0.33333334, %v297_v55 }
  0x94   : > { %v308_v60 = vmul.f32 0.6931472, %v739_v57 }
  0x95   : > { %v288_v61 = vmul.f32 0.33333334, %v287_v58  ;;  %v299_v62 = vmul.f32 1.442695, %v298_v59 }
  0x96   : > { %v309_v63 = vmul.f32 0.33333334, %v308_v60  ;;  %v741_v1 = vpop.eup %740 }
  0x97   : > { %v289_v0 = vmul.f32 1.442695, %v288_v61  ;;  %746 = vpow2.f32 %v299_v62  ;;  %v743_v3 = vpop.eup %742  ;;  %v420_v4 = vmul.f32 0.6931472, %v741_v1 }
  0x98   : > { %v310_v2 = vmul.f32 1.442695, %v309_v63  ;;  %v430_v6 = vmul.f32 0.6931472, %v743_v3  ;;  %v745_v8 = vpop.eup %744 }
  0x99   : > { %748 = vpow2.f32 %v289_v0  ;;  %v421_v7 = vmul.f32 0.33333334, %v420_v4  ;;  %v441_v13 = vmul.f32 0.6931472, %v745_v8 }
  0x9a   : > { %750 = vpow2.f32 %v310_v2  ;;  %v431_v10 = vmul.f32 0.33333334, %v430_v6 }
  0x9b   : > { %v422_v12 = vmul.f32 1.442695, %v421_v7  ;;  %v442_v17 = vmul.f32 0.33333334, %v441_v13 }
  0x9c   : > { %v432_v15 = vmul.f32 1.442695, %v431_v10 }
  0x9d   : > { %752 = vpow2.f32 %v422_v12  ;;  %v443_v23 = vmul.f32 1.442695, %v442_v17 }
  0x9e   : > { %754 = vpow2.f32 %v432_v15 }
  0x9f   : > { %756 = vpow2.f32 %v443_v23 }
  0xa1   : > { %v747_v19 = vpop.eup %746 }
  0xa2   : > { %v304_v24 = vsel %vm303_vm6, %v747_v19, %v302_v14 }
  0xa3   : > { %v749_v26 = vpop.eup %748 }
  0xa4   : > { %v751_v28 = vpop.eup %750  ;;  %v294_v29 = vsel %vm293_vm7, %v749_v26, %v292_v18 }
  0xa5   : > { %v315_v30 = vsel %vm314_vm8, %v751_v28, %v313_v21  ;;  %v316_v31 = vsub.f32 %v294_v29, %v304_v24 }
  0xa6   : > { %v318_v32 = vsub.f32 %v304_v24, %v315_v30 }
  0xa7   : > { %v1177_v35 = vmul.f32 500.0, %v316_v31  ;;  %v753_v37 = vpop.eup %752 }
  0xa8   : > { %v1180_v16 = vmul.f32 200.0, %v318_v32  ;;  %v755_v39 = vpop.eup %754  ;;  %v427_v41 = vsel %vm426_vm9, %v753_v37, %v425_v33 }
  0xa9   : > { %v1184_v38 = vand.u32 2147483647, %v1177_v35  ;;  %v437_v20 = vsel %vm436_vm10, %v755_v39, %v435_v36  ;;  %v757_v44 = vpop.eup %756  ;;  %vm349_vm1 = vcmp.lt.f32.partialorder %v1177_v35, 0.0 }
  0xaa   : > { %v1187_v40 = vand.u32 2147483647, %v1180_v16  ;;  %v449_v43 = vsub.f32 %v427_v41, %v437_v20  ;;  %v448_v45 = vsel %vm447_vm11, %v757_v44, %v446_v42  ;;  %vm352_vm2 = vcmp.lt.f32.partialorder %v1180_v16, 0.0 }
  0xab   : > { %v451_v48 = vsub.f32 %v437_v20, %v448_v45 }
  0xac   : > { %v322_v22 = vmax.f32 %v1184_v38, %v1187_v40  ;;  %v1192_v46 = vmul.f32 500.0, %v449_v43  ;;  %v323_v53 = vmin.f32 %v1184_v38, %v1187_v40  ;;  %vm346_vm0 = vcmp.gt.f32.partialorder %v1187_v40, %v1184_v38 }
  0xad   : > { %v1194_v49 = vmul.f32 200.0, %v451_v48 }
  0xae   : > { %vm324_vm12 = vcmp.eq.f32.partialorder %v322_v22, 0.0  ;;  %v1197_v50 = vand.u32 2147483647, %v1192_v46  ;;  %vm482_vm4 = vcmp.lt.f32.partialorder %v1192_v46, 0.0 }
  0xaf   : > { %v325_v47 = vsel %vm324_vm12, 1.0, %v322_v22  ;;  %v454_v51 = vand.u32 2147483647, %v1194_v49  ;;  %vm485_vm5 = vcmp.lt.f32.partialorder %v1194_v49, 0.0 }
  0xb0   : > { %758 = vrcp.f32 %v325_v47 }
  0xb1   : > { %v455_v52 = vmax.f32 %v1197_v50, %v454_v51  ;;  %v456_v58 = vmin.f32 %v1197_v50, %v454_v51  ;;  %vm479_vm3 = vcmp.gt.f32.partialorder %v454_v51, %v1197_v50 }
  0xb3   : > { %vm457_vm13 = vcmp.eq.f32.partialorder %v455_v52, 0.0 }
  0xb4   : > { %v458_v54 = vsel %vm457_vm13, 1.0, %v455_v52 }
  0xb5   : > { %760 = vrcp.f32 %v458_v54 }
  0xba   : > { %v759_v55 = vpop.eup %758 }
  0xbb   : > { %v327_v56 = vmul.f32 %v759_v55, %v323_v53 }
  0xbd   : > { %v330_v57 = vadd.f32 1.0, %v327_v56  ;;  %v624_v61 = vadd.f32 -1.0, %v327_v56  ;;  %vm328_vm14 = vcmp.gt.f32.partialorder %v327_v56, 0.41421357 }
  0xbf   : > { %762 = vrcp.f32 %v330_v57  ;;  %v761_v59 = vpop.eup %760 }
  0xc0   : > { %v460_v60 = vmul.f32 %v761_v59, %v456_v58 }
  0xc2   : > { %v463_v62 = vadd.f32 1.0, %v460_v60  ;;  %v629_v4 = vadd.f32 -1.0, %v460_v60  ;;  %vm461_vm15 = vcmp.gt.f32.partialorder %v460_v60, 0.41421357 }
  0xc4   : > { %764 = vrcp.f32 %v463_v62 }
  0xc9   : > { %v763_v63 = vpop.eup %762 }
  0xca   : > { %v332_v0 = vmul.f32 %v763_v63, %v624_v61 }
  0xcc   : > { %v333_v1 = vsel %vm328_vm14, %v332_v0, %v327_v56 }
  0xcd   : > { %v334_v2 = vmul.f32 %v333_v1, %v333_v1 }
  0xce   : > { %v765_v6 = vpop.eup %764 }
  0xcf   : > { %v335_v3 = vmul.f32 0.080537446, %v334_v2  ;;  %v465_v8 = vmul.f32 %v765_v6, %v629_v4 }
  0xd1   : > { %v625_v5 = vadd.f32 -0.13877685, %v335_v3  ;;  %v466_v10 = vsel %vm461_vm15, %v465_v8, %v460_v60 }
  0xd2   : > { %v467_v11 = vmul.f32 %v466_v10, %v466_v10 }
  0xd3   : > { %v337_v7 = vmul.f32 %v625_v5, %v334_v2 }
  0xd4   : > { %v468_v13 = vmul.f32 0.080537446, %v467_v11 }
  0xd5   : > { %v338_v9 = vadd.f32 0.19977711, %v337_v7 }
  0xd6   : > { %v630_v15 = vadd.f32 -0.13877685, %v468_v13 }
  0xd7   : > { %v339_v12 = vmul.f32 %v338_v9, %v334_v2 }
  0xd8   : > { %v470_v18 = vmul.f32 %v630_v15, %v467_v11 }
  0xd9   : > { %v626_v14 = vadd.f32 -0.3333295, %v339_v12 }
  0xda   : > { %v471_v21 = vadd.f32 0.19977711, %v470_v18 }
  0xdb   : > { %v341_v17 = vmul.f32 %v626_v14, %v334_v2 }
  0xdc   : > { %v472_v24 = vmul.f32 %v471_v21, %v467_v11 }
  0xdd   : > { %v342_v19 = vmul.f32 %v341_v17, %v333_v1 }
  0xde   : > { %v631_v26 = vadd.f32 -0.3333295, %v472_v24 }
  0xdf   : > { %v343_v23 = vadd.f32 %v342_v19, %v333_v1 }
  0xe0   : > { %v474_v29 = vmul.f32 %v631_v26, %v467_v11 }
  0xe1   : > { %v344_v25 = vadd.f32 0.7853982, %v343_v23 }
  0xe2   : > { %v475_v31 = vmul.f32 %v474_v29, %v466_v10 }
  0xe3   : > { %v345_v27 = vsel %vm328_vm14, %v344_v25, %v343_v23 }
  0xe4   : > { %v347_v28 = vsub.f32 1.5707964, %v345_v27  ;;  %v476_v33 = vadd.f32 %v475_v31, %v466_v10 }
  0xe6   : > { %v348_v30 = vsel %vm346_vm0, %v347_v28, %v345_v27  ;;  %v477_v36 = vadd.f32 0.7853982, %v476_v33 }
  0xe7   : > { %v350_v32 = vsub.f32 3.1415927, %v348_v30 }
  0xe8   : > { %v478_v39 = vsel %vm461_vm15, %v477_v36, %v476_v33 }
  0xe9   : > { %v351_v34 = vsel %vm349_vm1, %v350_v32, %v348_v30  ;;  %v480_v41 = vsub.f32 1.5707964, %v478_v39 }
  0xea   : > { %v353_v37 = vsub.f32 0.0, %v351_v34 }
  0xeb   : > { %v481_v40 = vsel %vm479_vm3, %v480_v41, %v478_v39 }
  0xec   : > { %v354_v38 = vsel %vm352_vm2, %v353_v37, %v351_v34  ;;  %v483_v35 = vsub.f32 3.1415927, %v481_v40 }
  0xed   : > { %v356_v42 = vadd.f32 6.2831855, %v354_v38  ;;  %vm355_vm6 = vcmp.lt.f32.partialorder %v354_v38, 0.0 }
  0xee   : > { %v484_v20 = vsel %vm482_vm4, %v483_v35, %v481_v40 }
  0xef   : > { %v486_v22 = vsub.f32 0.0, %v484_v20  ;;  %v357_v43 = vsel %vm355_vm6, %v356_v42, %v354_v38 }
  0xf1   : > { %v487_v16 = vsel %vm485_vm5, %v486_v22, %v484_v20 }
  0xf2   : > { %vm488_vm7 = vcmp.lt.f32.partialorder %v487_v16, 0.0  ;;  %v489_v44 = vadd.f32 6.2831855, %v487_v16 }
  0xf4   : > { %v490_v45 = vsel %vm488_vm7, %v489_v44, %v487_v16 }
  0xf5   : > { %v491_v47 = vsub.f32 %v357_v43, %v490_v45 }
  0xf7   : > { %v492_v46 = vand.u32 2147483647, %v491_v47 }
  0xf9   : > { %496 = vst [vmem:[%s217_s15] sm:$0xff] %v492_v46 }
  0xfa   : > { %839 = shalt.err (!%p836_p11)
}
  0xfb   : > { %s840_s4 = scalar_lea.hbm %s1220_s3, 128  ;;  %s844_s18 = scalar_lea.hbm %s1271_s2, 256 }
  0xfc   : > { %p841_p4 = scmp.ne.s32.totalorder %s1220_s3, %s840_s4  ;;  %p845_p3 = scmp.lt.u32.totalorder %s1220_s3, %s1271_s2 }
  0xfd   : > { %p846_p5 = scmp.lt.u32.totalorder %s844_s18, %s840_s4  ;;  %p848_p0 = scmp.lt.u32.totalorder %s840_s4, %s1220_s3 }
  0xfe   : > { %p842_p10 = pnand %p841_p4, %p1281_p2 }
  0xff   : > { %p847_p8 = por %p846_p5, %p845_p3 }
 0x100   : > { %p843_p1 = pneg %p842_p10 }
 0x101   : > { %p849_p12 = por %p848_p0, %p847_p8 }
 0x103   : > { %p850_p13 = pnand %p849_p12, %p843_p1 }
 0x105   : > { %853 = shalt.err (!%p850_p13)
}
 0x106   : > { %643 = dma.vmem_to_hbm [thread:$0]  (%p1281_p2), %s1222_s16, 128, %s1220_s3, %s498_s19  }
 0x107 PF: > { %s523_s7 = sand.u32 1, %s892_s9   ;;  %p1282_p6 = scmp.ne.s32.totalorder %s1277_s24, 0 }
 0x108   : > { %p1283_p7 = scmp.ge.s32.totalorder %s912_s14, 2  ;;  %s524_s21 = scalar_lea.sflag [#allocation4], %s523_s7 }
 0x10a   : > { %p653_p9 = pnand %p1283_p7, %p1282_p6 }
 0x10c   : > { %887 = dma.done.wait (!%p653_p9), %s524_s21, 128  }
 0x10d   : > { %889 = vsyncadd (!%p653_p9), %s524_s21, 4294967168  ;;  %s21_s14 = sadd.s32 1, %s912_s14   ;;  %s1284_s9 = smov %s896_s10 }
 0x10e   : > { %p18_p11 = scmp.ge.s32.totalorder %s21_s14, 4   ;;  %s1285_s10 = smov %s900_s11 }
 0x10f   : > { %s1286_s11 = smov %s991_s23  ;;  %s1287_s12 = smov %s908_s13 }
 0x110   : > { %s1288_s13 = smov %s1290_s17  ;;  %20 = sbr.rel (!%p18_p11) target bundleno = 8 (0x8), region = 94 }
 0x117   :  { %529 = vsyncpa [#allocation3], 1 }
 0x118   :  { %531 = vsyncpa [#allocation3 + $0x1], 1 }
 0x119   :  { %532 = vsyncpa [#allocation6], 1 }
 0x11a   :  { %534 = vsyncpa [#allocation6 + $0x1], 1 }
 0x11b   :  { %535 = vsyncpa [#allocation4], 1 }
 0x11c   :  { %537 = vsyncpa [#allocation4 + $0x1], 1 }

</bundles_post_ra>
